<compile_context>
chip_gen: v6e
topology: v6e:2x2x1
jax: 0.10.0
libtpu: 0.0.40
codegen_flags: <defaults>
</compile_context>

<pallas_src>
import jax
import jax.numpy as jnp
from jax.experimental import pallas as pl
from jax.experimental.pallas import tpu as pltpu


def _round_up(n, m):
    return ((n + m - 1) // m) * m


def _netfull_kernel(x_ref, w1_ref, b1_ref, w2_ref, b2_ref, o_ref):
    # x_ref:  [TM, 784]  f32  (cast to bf16 here; avoids a wrapper cast pass)
    # w1_ref: [784, 256] bf16    b1_ref: [1, 256] f32
    # w2_ref: [256, 128] bf16    b2_ref: [1, 128] f32 (cols 10.. = -1e30)
    # o_ref:  [TM, 128]  f32     (cols 10.. are junk, sliced off in wrapper)
    x_bf = x_ref[...].astype(jnp.bfloat16)

    # Layer 1: Linear(784 -> 256 padded) + tanh, f32 accumulation.
    h = jnp.dot(x_bf, w1_ref[...], preferred_element_type=jnp.float32)
    h = jnp.tanh(h + b1_ref[...])

    # Layer 2: Linear(256 padded -> 128 padded). Padded hidden units are 0 and
    # the matching W2 rows are 0; padded output columns get -1e30 bias so they
    # vanish in the softmax below. Result is exact for the real 10 classes.
    logits = jnp.dot(h.astype(w2_ref.dtype), w2_ref[...],
                     preferred_element_type=jnp.float32) + b2_ref[...]

    # log_softmax over the last axis, max-shifted for stability. The -1e30
    # padded logits never win the max and exp(-1e30 - m) underflows to 0.
    m = jnp.max(logits, axis=-1, keepdims=True)
    shifted = logits - m
    lse = jnp.log(jnp.sum(jnp.exp(shifted), axis=-1, keepdims=True))
    o_ref[...] = shifted - lse


def netfull_forward(x, w1, b1, w2, b2, *, tm_cap=1024):
    """x: [B, 1, 28, 28] float32. Returns [B, 10] float32 log-probabilities."""
    B = x.shape[0]
    x_flat = x.reshape(B, -1)                 # [B, 784], same as torch .view
    IN = x_flat.shape[1]                      # 784
    H = w1.shape[1]                           # 200
    OUT = w2.shape[1]                         # 10

    H_pad = _round_up(H, 128)                 # 256
    OUT_pad = _round_up(OUT, 128)             # 128

    # Hidden-dim padding (exact): zero W1 columns / b1 entries -> tanh(0) = 0,
    # and the matching W2 rows are zero.
    w1p = jnp.pad(w1, ((0, 0), (0, H_pad - H))).astype(jnp.bfloat16)
    b1p = jnp.pad(b1, (0, H_pad - H)).reshape(1, H_pad).astype(jnp.float32)
    # Output-lane padding (exact): zero W2 columns; padded b2 entries are a
    # large finite negative so the padded logits underflow in exp().
    w2p = jnp.pad(w2, ((0, H_pad - H), (0, OUT_pad - OUT))).astype(jnp.bfloat16)
    b2p = jnp.concatenate(
        [b2.astype(jnp.float32),
         jnp.full((OUT_pad - OUT,), -1e30, dtype=jnp.float32)]
    ).reshape(1, OUT_pad)

    # Batch tile selection.
    if B <= 256:
        # Tiny batch: one 8-aligned tile (pipelining / megacore irrelevant).
        TM = max(8, _round_up(B, 8))
    else:
        # >= 4 grid steps for DMA/compute overlap and 2-TC sharding on v7x;
        # 256-row aligned for full MXU utilization; capped at 1024 rows so
        # double-buffered f32 x tiles stay well inside v7x's VMEM budget.
        TM = min(tm_cap, max(256, _round_up(pl.cdiv(B, 4), 256)))

    grid = (pl.cdiv(B, TM),)                  # ragged last block OK (see top)

    out = pl.pallas_call(
        _netfull_kernel,
        out_shape=jax.ShapeDtypeStruct((B, OUT_pad), jnp.float32),
        grid_spec=pltpu.PrefetchScalarGridSpec(
            num_scalar_prefetch=0,
            grid=grid,
            in_specs=[
                pl.BlockSpec((TM, IN), lambda i: (i, 0)),          # x: streamed
                pl.BlockSpec((IN, H_pad), lambda i: (0, 0)),       # w1: resident
                pl.BlockSpec((1, H_pad), lambda i: (0, 0)),        # b1: resident
                pl.BlockSpec((H_pad, OUT_pad), lambda i: (0, 0)),  # w2: resident
                pl.BlockSpec((1, OUT_pad), lambda i: (0, 0)),      # b2: resident
            ],
            out_specs=pl.BlockSpec((TM, OUT_pad), lambda i: (i, 0)),
        ),
        compiler_params=pltpu.CompilerParams(
            dimension_semantics=("parallel",),   # megacore sharding on v7x
        ),
    )(x_flat, w1p, b1p, w2p, b2p)
    return out[:, :OUT]


def _init_params(key):
    """Deterministic init matching nn.Linear shapes (stored as [in, out])."""
    k1, k2, k3, k4 = jax.random.split(key, 4)
    in1, out1 = 28 * 28, 200
    in2, out2 = 200, 10
    lim1 = 1.0 / jnp.sqrt(in1)
    lim2 = 1.0 / jnp.sqrt(in2)
    w1 = jax.random.uniform(k1, (in1, out1), jnp.float32, -lim1, lim1)
    b1 = jax.random.uniform(k2, (out1,), jnp.float32, -lim1, lim1)
    w2 = jax.random.uniform(k3, (in2, out2), jnp.float32, -lim2, lim2)
    b2 = jax.random.uniform(k4, (out2,), jnp.float32, -lim2, lim2)
    return w1, b1, w2, b2


if __name__ == "__main__":
    key = jax.random.PRNGKey(0)
    kx, kp = jax.random.split(key)

    B = 8
    x = jax.random.normal(kx, (B, 1, 28, 28), dtype=jnp.float32)
    w1, b1, w2, b2 = _init_params(kp)

    out = netfull_forward(x, w1, b1, w2, b2)
    out = jax.block_until_ready(out)

    # Pure-JAX reference using the same bf16-input / f32-accumulation recipe
    # as the kernel (so tolerances stay tight).
    x_bf = x.reshape(B, -1).astype(jnp.bfloat16)
    h_ref = jnp.tanh(
        jnp.dot(x_bf, w1.astype(jnp.bfloat16),
                preferred_element_type=jnp.float32) + b1)
    logits_ref = jnp.dot(h_ref.astype(jnp.bfloat16), w2.astype(jnp.bfloat16),
                         preferred_element_type=jnp.float32) + b2
    ref = jax.nn.log_softmax(logits_ref, axis=1)

    assert out.shape == (B, 10)
    assert jnp.allclose(out, ref, atol=2e-3, rtol=2e-3), "mismatch vs reference"

    print("KERNEL_OK")
</pallas_src>

<mosaic_0001>
module attributes {stable_mosaic.version = 11 : i64} {
  func.func @_netfull_kernel(%arg0: i32, %arg1: memref<8x784xf32, #tpu.memory_space<vmem>>, %arg2: memref<784x256xbf16, #tpu.memory_space<vmem>>, %arg3: memref<1x256xf32, #tpu.memory_space<vmem>>, %arg4: memref<256x128xbf16, #tpu.memory_space<vmem>>, %arg5: memref<1x128xf32, #tpu.memory_space<vmem>>, %arg6: memref<8x128xf32, #tpu.memory_space<vmem>>) attributes {dimension_semantics = [#tpu.dimension_semantics<parallel>], iteration_bounds = array<i64: 1>, scalar_prefetch = 0 : i64, scratch_operands = 0 : i64, tpu.core_type = #tpu.core_type<tc>, window_params = [{transform_indices = @transform_0, window_bounds = array<i64: 8, 784>}, {pipeline_mode = #tpu.pipeline_mode<synchronous>, transform_indices = @transform_1, window_bounds = array<i64: 784, 256>}, {pipeline_mode = #tpu.pipeline_mode<synchronous>, transform_indices = @transform_2, window_bounds = array<i64: 1, 256>}, {pipeline_mode = #tpu.pipeline_mode<synchronous>, transform_indices = @transform_3, window_bounds = array<i64: 256, 128>}, {pipeline_mode = #tpu.pipeline_mode<synchronous>, transform_indices = @transform_4, window_bounds = array<i64: 1, 128>}, {transform_indices = @transform_5, window_bounds = array<i64: 8, 128>}]} {
    %c0 = arith.constant 0 : index
    %c0_0 = arith.constant 0 : index
    %0 = vector.load %arg1[%c0, %c0_0] : memref<8x784xf32, #tpu.memory_space<vmem>>, vector<8x784xf32>
    %1 = arith.truncf %0 : vector<8x784xf32> to vector<8x784xbf16>
    %c0_1 = arith.constant 0 : index
    %c0_2 = arith.constant 0 : index
    %2 = vector.load %arg2[%c0_1, %c0_2] : memref<784x256xbf16, #tpu.memory_space<vmem>>, vector<784x256xbf16>
    %cst = arith.constant dense<0.000000e+00> : vector<8x256xf32>
    %3 = tpu.matmul %1, %2, %cst {dimension_numbers = #tpu.dot_dimension_numbers<[1], [0], [0], [1], [0, 0, 1, 1], [], []>} : vector<8x784xbf16>, vector<784x256xbf16>, vector<8x256xf32> -> vector<8x256xf32>
    %c0_3 = arith.constant 0 : index
    %c0_4 = arith.constant 0 : index
    %4 = vector.load %arg3[%c0_3, %c0_4] : memref<1x256xf32, #tpu.memory_space<vmem>>, vector<1x256xf32>
    %5 = vector.broadcast %4 : vector<1x256xf32> to vector<8x256xf32>
    %6 = arith.addf %3, %5 : vector<8x256xf32>
    %7 = math.tanh %6 : vector<8x256xf32>
    %8 = arith.truncf %7 : vector<8x256xf32> to vector<8x256xbf16>
    %c0_5 = arith.constant 0 : index
    %c0_6 = arith.constant 0 : index
    %9 = vector.load %arg4[%c0_5, %c0_6] : memref<256x128xbf16, #tpu.memory_space<vmem>>, vector<256x128xbf16>
    %cst_7 = arith.constant dense<0.000000e+00> : vector<8x128xf32>
    %10 = tpu.matmul %8, %9, %cst_7 {dimension_numbers = #tpu.dot_dimension_numbers<[1], [0], [0], [1], [0, 0, 1, 1], [], []>} : vector<8x256xbf16>, vector<256x128xbf16>, vector<8x128xf32> -> vector<8x128xf32>
    %c0_8 = arith.constant 0 : index
    %c0_9 = arith.constant 0 : index
    %11 = vector.load %arg5[%c0_8, %c0_9] : memref<1x128xf32, #tpu.memory_space<vmem>>, vector<1x128xf32>
    %12 = vector.broadcast %11 : vector<1x128xf32> to vector<8x128xf32>
    %13 = arith.addf %10, %12 : vector<8x128xf32>
    %cst_10 = arith.constant dense<0xFF800000> : vector<8xf32>
    %14 = vector.multi_reduction <maximumf>, %13, %cst_10 [1] : vector<8x128xf32> to vector<8xf32>
    %15 = vector.shape_cast %14 : vector<8xf32> to vector<8x1xf32>
    %16 = vector.broadcast %15 : vector<8x1xf32> to vector<8x128xf32>
    %17 = arith.subf %13, %16 : vector<8x128xf32>
    %18 = math.exp %17 : vector<8x128xf32>
    %cst_11 = arith.constant dense<0.000000e+00> : vector<8xf32>
    %19 = vector.multi_reduction <add>, %18, %cst_11 [1] : vector<8x128xf32> to vector<8xf32>
    %20 = vector.shape_cast %19 : vector<8xf32> to vector<8x1xf32>
    %21 = math.log %20 : vector<8x1xf32>
    %22 = vector.broadcast %21 : vector<8x1xf32> to vector<8x128xf32>
    %23 = arith.subf %17, %22 : vector<8x128xf32>
    %c0_12 = arith.constant 0 : index
    %c0_13 = arith.constant 0 : index
    %24 = vector.load %arg6[%c0_12, %c0_13] : memref<8x128xf32, #tpu.memory_space<vmem>>, vector<8x128xf32>
    tpu.vector_store %arg6[%c0_12, %c0_13], %23 {strides = array<i32>} : memref<8x128xf32, #tpu.memory_space<vmem>>, vector<8x128xf32>,
    return
  }
  func.func @transform_0(%arg0: i32) -> (i32, i32) {
    %c0_i32 = arith.constant 0 : i32
    %c0_i32_0 = arith.constant 0 : i32
    return %arg0, %c0_i32 : i32, i32
  }
  func.func @transform_1(%arg0: i32) -> (i32, i32) {
    %c0_i32 = arith.constant 0 : i32
    %c0_i32_0 = arith.constant 0 : i32
    %c0_i32_1 = arith.constant 0 : i32
    return %c0_i32, %c0_i32_0 : i32, i32
  }
  func.func @transform_2(%arg0: i32) -> (i32, i32) {
    %c0_i32 = arith.constant 0 : i32
    %c0_i32_0 = arith.constant 0 : i32
    %c0_i32_1 = arith.constant 0 : i32
    return %c0_i32, %c0_i32_0 : i32, i32
  }
  func.func @transform_3(%arg0: i32) -> (i32, i32) {
    %c0_i32 = arith.constant 0 : i32
    %c0_i32_0 = arith.constant 0 : i32
    %c0_i32_1 = arith.constant 0 : i32
    return %c0_i32, %c0_i32_0 : i32, i32
  }
  func.func @transform_4(%arg0: i32) -> (i32, i32) {
    %c0_i32 = arith.constant 0 : i32
    %c0_i32_0 = arith.constant 0 : i32
    %c0_i32_1 = arith.constant 0 : i32
    return %c0_i32, %c0_i32_0 : i32, i32
  }
  func.func @transform_5(%arg0: i32) -> (i32, i32) {
    %c0_i32 = arith.constant 0 : i32
    %c0_i32_0 = arith.constant 0 : i32
    return %arg0, %c0_i32 : i32, i32
  }
}

</mosaic_0001>

<bundles_post_ra>
// kernel: tpu_custom_call.1
= control target key start
LH: loop header
LB: loop body
LE: loop exit
PB: predicated region body
PF: predicated region fallthrough
CT: control target
= control target key end

     0   :  { %10 = vsyncpa [#allocation3], 0  ;;  %s1511_s0 = inlined_call_operand.hbm [shape: f32[8,784], index: 0, kind: input, shape index: {}]   ;;  %s1512_s1 = inlined_call_operand.hbm [shape: bf16[784,256], index: 1, kind: input, shape index: {}]   ;;  %s1513_s2 = inlined_call_operand.vmem [shape: f32[1,256], index: 2, kind: input, shape index: {}]   ;;  %s1514_s3 = inlined_call_operand.hbm [shape: bf16[256,128], index: 3, kind: input, shape index: {}]   ;;  %s1515_s4 = inlined_call_operand.vmem [shape: f32[1,128], index: 4, kind: input, shape index: {}]   ;;  %s1516_s5 = inlined_call_operand.hbm [shape: f32[8,128], index: 5, kind: output, shape index: {}]  }
   0x1   :  { %11 = vsyncpa [#allocation6], 0 }
   0x2   :  { %12 = vsyncpa [#allocation4], 0  ;;  %s1453_s18 = smov [#allocation5]  }
   0x3   :  { %s28_s19 = sshll.u32 %s1453_s18, 4  ;;  %s29_s19 = int_to_ptr.vmem [resolvable:$true] %s28_s19 }
   0x4   :  { %s1375_s20 = scalar_lea.vmem %s29_s19, 12544  ;;  %p1380_p1 = scmp.lt.s32.totalorder %s29_s19, %s29_s19 }
   0x5   :  { %p1376_p0 = scmp.ne.s32.totalorder %s29_s19, %s1375_s20  ;;  %p1381_p2 = scmp.lt.s32.totalorder %s1375_s20, %s1375_s20 }
   0x7   :  { %p1382_p3 = por %p1381_p2, %p1380_p1 }
   0x9   :  { %p1383_p4 = pnand %p1382_p3, %p1376_p0 }
   0xb   :  { %1386 = shalt.err (!%p1383_p4)
}
   0xc   :  { %s1454_s21 = smov 128   ;;  %s1455_s22 = smov 8  }
   0xd   :  { %34 = dma.hbm_to_vmem [thread:$0]  %s1512_s1, 12544, %s29_s19, [#allocation6], %s1454_s21, %s1454_s21, %s1455_s22  }
   0xe   :  { %s1456_s25 = smov [#allocation2]   ;;  %s1457_s27 = smov [#allocation7]  }
   0xf   :  { %s19_s26 = sshll.u32 %s1456_s25, 4  ;;  %s42_s28 = sshll.u32 %s1457_s27, 4  ;;  %s20_s26 = int_to_ptr.vmem [resolvable:$true] %s19_s26  ;;  %s43_s28 = int_to_ptr.vmem [resolvable:$true] %s42_s28 }
  0x10   :  { %s1395_s29 = scalar_lea.vmem %s20_s26, 896  ;;  %p1400_p6 = scmp.lt.s32.totalorder %s20_s26, %s20_s26 }
  0x11   :  { %p1396_p5 = scmp.ne.s32.totalorder %s20_s26, %s1395_s29  ;;  %p1401_p7 = scmp.lt.s32.totalorder %s1395_s29, %s1395_s29 }
  0x13   :  { %p1402_p8 = por %p1401_p7, %p1400_p6 }
  0x15   :  { %p1403_p9 = pnand %p1402_p8, %p1396_p5 }
  0x17   :  { %1406 = shalt.err (!%p1403_p9)
}
  0x18   :  { %22 = dma.hbm_to_vmem [thread:$0]  %s1511_s0, 896, %s20_s26, [#allocation3]  }
  0x19   :  { %s1415_s7 = scalar_lea.vmem %s43_s28, 2048  ;;  %p1420_p11 = scmp.lt.s32.totalorder %s43_s28, %s43_s28 }
  0x1a   :  { %p1416_p10 = scmp.ne.s32.totalorder %s43_s28, %s1415_s7  ;;  %p1421_p12 = scmp.lt.s32.totalorder %s1415_s7, %s1415_s7 }
  0x1c   :  { %p1422_p13 = por %p1421_p12, %p1420_p11 }
  0x1e   :  { %p1423_p0 = pnand %p1422_p13, %p1416_p10 }
  0x20   :  { %1426 = shalt.err (!%p1423_p0)
}
  0x21   :  { %s1458_s1 = smov 64   ;;  %s1459_s8 = smov 4  }
  0x22   :  { %48 = dma.hbm_to_vmem [thread:$0]  %s1514_s3, 2048, %s43_s28, [#allocation6], %s1458_s1, %s1458_s1, %s1459_s8  }
  0x23   :  { %1447 = dma.done.wait [#allocation3], 896  }
  0x24   :  { %1448 = vsyncadd [#allocation3], 4294966400 }
  0x25   :  { %1449 = dma.done.wait [#allocation6], 14592  }
  0x26   :  { %1450 = vsyncadd [#allocation6], 4294952704  ;;  %v1196_v0 = vld [vmem:[#allocation5 + $0x74] ss:$8 sps:$4 sm:$0xff]   ;;  %v1198_v1 = vld [vmem:[#allocation5 + $0x70] ss:$8 sps:$4 sm:$0xff]  }
  0x27   :  { %679 = vmatprep.subr.bf16.mxu0 %v1196_v0  ;;  %v1199_v2 = vld [vmem:[#allocation5 + $0x174] ss:$8 sps:$4 sm:$0xff]   ;;  %v1201_v3 = vld [vmem:[#allocation5 + $0x170] ss:$8 sps:$4 sm:$0xff]   ;;  %v1202_v4 = vld [vmem:[#allocation5 + $0x64] ss:$8 sps:$4 sm:$0xff]  }
  0x28   :  { %680 = vmatpush1.bf16.msra.mxu0 %v1198_v1  ;;  %v1204_v5 = vld [vmem:[#allocation5 + $0x60] ss:$8 sps:$4 sm:$0xff]   ;;  %720 = vmatprep.subr.bf16.mxu1 %v1199_v2  ;;  %v1205_v6 = vld [vmem:[#allocation5 + $0x164] ss:$8 sps:$4 sm:$0xff]   ;;  %v1208_v8 = vld [vmem:[#allocation5 + $0x54] ss:$8 sps:$4 sm:$0xff]  }
  0x29   :  { %721 = vmatpush1.bf16.msra.mxu1 %v1201_v3  ;;  %681 = vmatprep.subr.bf16.mxu0 %v1202_v4  ;;  %v1207_v7 = vld [vmem:[#allocation5 + $0x160] ss:$8 sps:$4 sm:$0xff]   ;;  %v1210_v9 = vld [vmem:[#allocation5 + $0x50] ss:$8 sps:$4 sm:$0xff]   ;;  %v1211_v10 = vld [vmem:[#allocation5 + $0x154] ss:$8 sps:$4 sm:$0xff]  }
  0x2a   :  { %722 = vmatprep.subr.bf16.mxu1 %v1205_v6  ;;  %v1214_v11 = vld [vmem:[#allocation5 + $0x44] ss:$8 sps:$4 sm:$0xff]   ;;  %v1213_v12 = vld [vmem:[#allocation5 + $0x150] ss:$8 sps:$4 sm:$0xff]   ;;  %v1216_v14 = vld [vmem:[#allocation5 + $0x40] ss:$8 sps:$4 sm:$0xff]  }
  0x2b   :  { %v1217_v13 = vld [vmem:[#allocation5 + $0x144] ss:$8 sps:$4 sm:$0xff]   ;;  %v1220_v15 = vld [vmem:[#allocation5 + $0x34] ss:$8 sps:$4 sm:$0xff]   ;;  %v1219_v16 = vld [vmem:[#allocation5 + $0x140] ss:$8 sps:$4 sm:$0xff]  }
  0x2c   :  { %682 = vmatpush1.bf16.msra.mxu0 %v1204_v5  ;;  %v1223_v17 = vld [vmem:[#allocation5 + $0x134] ss:$8 sps:$4 sm:$0xff]   ;;  %v1222_v18 = vld [vmem:[#allocation5 + $0x30] ss:$8 sps:$4 sm:$0xff]   ;;  %v1226_v19 = vld [vmem:[#allocation5 + $0x24] ss:$8 sps:$4 sm:$0xff]  }
  0x2d   :  { %683 = vmatprep.subr.bf16.mxu0 %v1208_v8  ;;  %723 = vmatpush1.bf16.msra.mxu1 %v1207_v7  ;;  %v1225_v20 = vld [vmem:[#allocation5 + $0x130] ss:$8 sps:$4 sm:$0xff]   ;;  %v1229_v21 = vld [vmem:[#allocation5 + $0x124] ss:$8 sps:$4 sm:$0xff]   ;;  %v1228_v22 = vld [vmem:[#allocation5 + $0x20] ss:$8 sps:$4 sm:$0xff]  }
  0x2e   :  { %724 = vmatprep.subr.bf16.mxu1 %v1211_v10  ;;  %v1232_v23 = vld [vmem:[#allocation5 + $0x14] ss:$8 sps:$4 sm:$0xff]   ;;  %v1231_v24 = vld [vmem:[#allocation5 + $0x120] ss:$8 sps:$4 sm:$0xff]   ;;  %v1234_v26 = vld [vmem:[#allocation5 + $0x10] ss:$8 sps:$4 sm:$0xff]  }
  0x2f   :  { %v1235_v25 = vld [vmem:[#allocation5 + $0x114] ss:$8 sps:$4 sm:$0xff]   ;;  %v1238_v27 = vld [vmem:[#allocation5 + $0x4] ss:$8 sps:$4 sm:$0xff]   ;;  %v1237_v28 = vld [vmem:[#allocation5 + $0x110] ss:$8 sps:$4 sm:$0xff]  }
  0x30   :  { %684 = vmatpush1.bf16.msra.mxu0 %v1210_v9  ;;  %v1241_v29 = vld [vmem:[#allocation5 + $0x104] ss:$8 sps:$4 sm:$0xff]   ;;  %v1240_v30 = vld [vmem:[#allocation5] ss:$8 sps:$4 sm:$0xff]   ;;  %v1244_v31 = vld [vmem:[#allocation5 + $0xf4] ss:$8 sps:$4 sm:$0xff]  }
  0x31   :  { %685 = vmatprep.subr.bf16.mxu0 %v1214_v11  ;;  %725 = vmatpush1.bf16.msra.mxu1 %v1213_v12  ;;  %v1243_v32 = vld [vmem:[#allocation5 + $0x100] ss:$8 sps:$4 sm:$0xff]   ;;  %v1247_v33 = vld [vmem:[#allocation5 + $0x1f4] ss:$8 sps:$4 sm:$0xff]   ;;  %v1246_v34 = vld [vmem:[#allocation5 + $0xf0] ss:$8 sps:$4 sm:$0xff]  }
  0x32   :  { %726 = vmatprep.subr.bf16.mxu1 %v1217_v13  ;;  %v1250_v35 = vld [vmem:[#allocation5 + $0xe4] ss:$8 sps:$4 sm:$0xff]   ;;  %v1249_v36 = vld [vmem:[#allocation5 + $0x1f0] ss:$8 sps:$4 sm:$0xff]   ;;  %v1252_v38 = vld [vmem:[#allocation5 + $0xe0] ss:$8 sps:$4 sm:$0xff]  }
  0x33   :  { %v1253_v37 = vld [vmem:[#allocation5 + $0x1e4] ss:$8 sps:$4 sm:$0xff]   ;;  %v1256_v39 = vld [vmem:[#allocation5 + $0xd4] ss:$8 sps:$4 sm:$0xff]   ;;  %v1255_v40 = vld [vmem:[#allocation5 + $0x1e0] ss:$8 sps:$4 sm:$0xff]  }
  0x34   :  { %686 = vmatpush1.bf16.msra.mxu0 %v1216_v14  ;;  %v1259_v41 = vld [vmem:[#allocation5 + $0x1d4] ss:$8 sps:$4 sm:$0xff]   ;;  %v1258_v42 = vld [vmem:[#allocation5 + $0xd0] ss:$8 sps:$4 sm:$0xff]   ;;  %v1262_v43 = vld [vmem:[#allocation5 + $0xc4] ss:$8 sps:$4 sm:$0xff]  }
  0x35   :  { %687 = vmatprep.subr.bf16.mxu0 %v1220_v15  ;;  %727 = vmatpush1.bf16.msra.mxu1 %v1219_v16  ;;  %v1261_v44 = vld [vmem:[#allocation5 + $0x1d0] ss:$8 sps:$4 sm:$0xff]   ;;  %v1265_v45 = vld [vmem:[#allocation5 + $0x1c4] ss:$8 sps:$4 sm:$0xff]   ;;  %v1264_v47 = vld [vmem:[#allocation5 + $0xc0] ss:$8 sps:$4 sm:$0xff]  }
  0x36   :  { %728 = vmatprep.subr.bf16.mxu1 %v1223_v17  ;;  %v62_v46 = vld [vmem:[#allocation2 + $0x8] sm:$0xff]  ;;  %v64_v50 = vld [vmem:[#allocation2 + $0x18] sm:$0xff]  ;;  %v61_v4 = vld [vmem:[#allocation2] sm:$0xff]  ;;  %vm675_vm0 = vcmask 130048   ;;  %s1461_s12 = smov [#allocation8]  }
  0x37   :  { %v69_v48 = vpack.c.bf16 %v62_v46, %v62_v46  ;;  %v1268_v49 = vld [vmem:[#allocation5 + $0xb4] ss:$8 sps:$4 sm:$0xff]   ;;  %v1267_v51 = vld [vmem:[#allocation5 + $0x1c0] ss:$8 sps:$4 sm:$0xff]   ;;  %v71_v52 = vpack.c.bf16 %v64_v50, %v64_v50  ;;  %v1270_v54 = vld [vmem:[#allocation5 + $0xb0] ss:$8 sps:$4 sm:$0xff]   ;;  %v68_v7 = vpack.c.bf16 %v61_v4, %v61_v4 }
  0x38   :  { %688 = vmatpush1.bf16.msra.mxu0 %v1222_v18  ;;  %v1271_v53 = vld [vmem:[#allocation5 + $0x1b4] ss:$8 sps:$4 sm:$0xff]   ;;  %v1274_v55 = vld [vmem:[#allocation5 + $0xa4] ss:$8 sps:$4 sm:$0xff]   ;;  %v1273_v56 = vld [vmem:[#allocation5 + $0x1b0] ss:$8 sps:$4 sm:$0xff]  }
  0x39   :  { %689 = vmatprep.subr.bf16.mxu0 %v1226_v19  ;;  %729 = vmatpush1.bf16.msra.mxu1 %v1225_v20  ;;  %v1277_v57 = vld [vmem:[#allocation5 + $0x1a4] ss:$8 sps:$4 sm:$0xff]   ;;  %v1276_v58 = vld [vmem:[#allocation5 + $0xa0] ss:$8 sps:$4 sm:$0xff]   ;;  %v1280_v59 = vld [vmem:[#allocation5 + $0x94] ss:$8 sps:$4 sm:$0xff]  }
  0x3a   :  { %730 = vmatprep.subr.bf16.mxu1 %v1229_v21  ;;  %711 = vmatprep.mubr.bf16.mxu0 %v69_v48  ;;  %v1279_v60 = vld [vmem:[#allocation5 + $0x1a0] ss:$8 sps:$4 sm:$0xff]   ;;  %v1283_v61 = vld [vmem:[#allocation5 + $0x194] ss:$8 sps:$4 sm:$0xff]   ;;  %v1282_v62 = vld [vmem:[#allocation5 + $0x90] ss:$8 sps:$4 sm:$0xff]  }
  0x3b   :  { %752 = vmatprep.mubr.bf16.mxu1 %v71_v52  ;;  %v1286_v63 = vld [vmem:[#allocation5 + $0x84] ss:$8 sps:$4 sm:$0xff]   ;;  %v1285_v0 = vld [vmem:[#allocation5 + $0x190] ss:$8 sps:$4 sm:$0xff]   ;;  %v1288_v1 = vld [vmem:[#allocation5 + $0x80] ss:$8 sps:$4 sm:$0xff]  }
  0x3c   :  { %690 = vmatpush1.bf16.msra.mxu0 %v1228_v22  ;;  %v1289_v2 = vld [vmem:[#allocation5 + $0x184] ss:$8 sps:$4 sm:$0xff]   ;;  %v1291_v3 = vld [vmem:[#allocation5 + $0x180] ss:$8 sps:$4 sm:$0xff]   ;;  %v1294_v5 = vld [vmem:[#allocation5 + $0x274] ss:$8 sps:$4 sm:$0xff]  }
  0x3d   :  { %691 = vmatprep.subr.bf16.mxu0 %v1232_v23  ;;  %731 = vmatpush1.bf16.msra.mxu1 %v1231_v24  ;;  %v63_v6 = vld [vmem:[#allocation2 + $0x10] sm:$0xff]  ;;  %v1297_v9 = vld [vmem:[#allocation5 + $0x264] ss:$8 sps:$4 sm:$0xff]   ;;  %v1337_v11 = vld [vmem:[#allocation5 + $0x300] ss:$8 sps:$4 sm:$0xff]   ;;  %v1460_v19 = vmov 0  }
  0x3e   :  { %732 = vmatprep.subr.bf16.mxu1 %v1235_v25  ;;  %v1292_v8 = vld [vmem:[#allocation5 + $0x270] ss:$8 sps:$4 sm:$0xff]   ;;  %v70_v10 = vpack.c.bf16 %v63_v6, %v63_v6  ;;  %v1339_v12 = vld [vmem:[#allocation5 + $0x304] ss:$8 sps:$4 sm:$0xff]   ;;  %v1295_v13 = vld [vmem:[#allocation5 + $0x260] ss:$8 sps:$4 sm:$0xff]  }
  0x3f   :  { %v1300_v14 = vld [vmem:[#allocation5 + $0x254] ss:$8 sps:$4 sm:$0xff]   ;;  %v1298_v18 = vld [vmem:[#allocation5 + $0x250] ss:$8 sps:$4 sm:$0xff]   ;;  %v1303_v20 = vld [vmem:[#allocation5 + $0x244] ss:$8 sps:$4 sm:$0xff]  }
  0x40   :  { %692 = vmatpush1.bf16.msra.mxu0 %v1234_v26  ;;  %v67_v15 = vld [vmem:[#allocation2 + $0x30] sm:$0xff]  ;;  %v66_v16 = vld [vmem:[#allocation2 + $0x28] sm:$0xff]  ;;  %v1301_v22 = vld [vmem:[#allocation5 + $0x240] ss:$8 sps:$4 sm:$0xff]   ;;  %s1039_s13 = sshll.u32 %s1461_s12, 4  ;;  %s1040_s13 = int_to_ptr.vmem [resolvable:$true] %s1039_s13 }
  0x41   :  { %693 = vmatprep.subr.bf16.mxu0 %v1238_v27  ;;  %733 = vmatpush1.bf16.msra.mxu1 %v1237_v28  ;;  %v73_v17 = vpack.c.bf16 %v66_v16, %v66_v16  ;;  %v74_v21 = vpack.c.bf16 %v67_v15, %v67_v15  ;;  %v1306_v23 = vld [vmem:[#allocation5 + $0x234] ss:$8 sps:$4 sm:$0xff]   ;;  %v1304_v24 = vld [vmem:[#allocation5 + $0x230] ss:$8 sps:$4 sm:$0xff]   ;;  %v1309_v25 = vld [vmem:[#allocation5 + $0x224] ss:$8 sps:$4 sm:$0xff]   ;;  %p1432_p2 = scmp.lt.s32.totalorder %s1040_s13, %s1040_s13 }
  0x42   :  { %734 = vmatprep.subr.bf16.mxu1 %v1241_v29  ;;  %v1307_v26 = vld [vmem:[#allocation5 + $0x220] ss:$8 sps:$4 sm:$0xff]   ;;  %v1312_v27 = vld [vmem:[#allocation5 + $0x214] ss:$8 sps:$4 sm:$0xff]   ;;  %v1310_v28 = vld [vmem:[#allocation5 + $0x210] ss:$8 sps:$4 sm:$0xff]  }
  0x43   :  { %v1315_v29 = vld [vmem:[#allocation5 + $0x204] ss:$8 sps:$4 sm:$0xff]   ;;  %v1340_v46 = vld [vmem:[#allocation5 + $0x280] ss:$8 sps:$4 sm:$0xff]  }
  0x44   :  { %694 = vmatpush1.bf16.msra.mxu0 %v1240_v30  ;;  %v1313_v30 = vld [vmem:[#allocation5 + $0x200] ss:$8 sps:$4 sm:$0xff]  }
  0x45   :  { %695 = vmatprep.subr.bf16.mxu0 %v1244_v31  ;;  %735 = vmatpush1.bf16.msra.mxu1 %v1243_v32  ;;  %v1318_v31 = vld [vmem:[#allocation5 + $0x2f4] ss:$8 sps:$4 sm:$0xff]   ;;  %v1316_v32 = vld [vmem:[#allocation5 + $0x2f0] ss:$8 sps:$4 sm:$0xff]   ;;  %v1344_v50 = vld [vmem:[#allocation7 + $0x38] sm:$0xff]  }
  0x46   :  { %736 = vmatprep.subr.bf16.mxu1 %v1247_v33  ;;  %v1321_v33 = vld [vmem:[#allocation5 + $0x2e4] ss:$8 sps:$4 sm:$0xff]   ;;  %v173_v16 = vld [vmem:[%s1513_s2] sm:$0x3] }
  0x47   :  { %v1346_v52 = vld [vmem:[#allocation7 + $0x30] sm:$0xff]  }
  0x48   :  { %696 = vmatpush2.bf16.msra.mxu0 %v1246_v34  ;;  %v1319_v34 = vld [vmem:[#allocation5 + $0x2e0] ss:$8 sps:$4 sm:$0xff]  }
  0x49   :  { %697 = vmatprep.subr.bf16.mxu0 %v1250_v35  ;;  %737 = vmatpush2.bf16.msra.mxu1 %v1249_v36  ;;  %v1324_v35 = vld [vmem:[#allocation5 + $0x2d4] ss:$8 sps:$4 sm:$0xff]   ;;  %v1322_v36 = vld [vmem:[#allocation5 + $0x2d0] ss:$8 sps:$4 sm:$0xff]  }
  0x4a   :  { %738 = vmatprep.subr.bf16.mxu1 %v1253_v37  ;;  %v1327_v37 = vld [vmem:[#allocation5 + $0x2c4] ss:$8 sps:$4 sm:$0xff]  }
  0x4c   :  { %698 = vmatpush2.bf16.msra.mxu0 %v1252_v38  ;;  %v1325_v38 = vld [vmem:[#allocation5 + $0x2c0] ss:$8 sps:$4 sm:$0xff]  }
  0x4d   :  { %699 = vmatprep.subr.bf16.mxu0 %v1256_v39  ;;  %739 = vmatpush2.bf16.msra.mxu1 %v1255_v40  ;;  %v1330_v39 = vld [vmem:[#allocation5 + $0x2b4] ss:$8 sps:$4 sm:$0xff]   ;;  %v1328_v40 = vld [vmem:[#allocation5 + $0x2b0] ss:$8 sps:$4 sm:$0xff]  }
  0x4e   :  { %740 = vmatprep.subr.bf16.mxu1 %v1259_v41  ;;  %v1333_v41 = vld [vmem:[#allocation5 + $0x2a4] ss:$8 sps:$4 sm:$0xff]  }
  0x50   :  { %700 = vmatpush2.bf16.msra.mxu0 %v1258_v42  ;;  %v1331_v42 = vld [vmem:[#allocation5 + $0x2a0] ss:$8 sps:$4 sm:$0xff]  }
  0x51   :  { %701 = vmatprep.subr.bf16.mxu0 %v1262_v43  ;;  %741 = vmatpush2.bf16.msra.mxu1 %v1261_v44  ;;  %v1336_v43 = vld [vmem:[#allocation5 + $0x294] ss:$8 sps:$4 sm:$0xff]   ;;  %v1334_v44 = vld [vmem:[#allocation5 + $0x290] ss:$8 sps:$4 sm:$0xff]  }
  0x52   :  { %742 = vmatprep.subr.bf16.mxu1 %v1265_v45  ;;  %v1342_v45 = vld [vmem:[#allocation5 + $0x284] ss:$8 sps:$4 sm:$0xff]  }
  0x54   :  { %702 = vmatpush2.bf16.msra.mxu0 %v1264_v47  ;;  %v65_v47 = vld [vmem:[#allocation2 + $0x20] sm:$0xff] }
  0x55   :  { %703 = vmatprep.subr.bf16.mxu0 %v1268_v49  ;;  %743 = vmatpush2.bf16.msra.mxu1 %v1267_v51  ;;  %v72_v48 = vpack.c.bf16 %v65_v47, %v65_v47  ;;  %v1343_v49 = vld [vmem:[#allocation7 + $0x78] sm:$0xff]   ;;  %v1345_v51 = vld [vmem:[#allocation7 + $0x70] sm:$0xff]  }
  0x56   :  { %744 = vmatprep.subr.bf16.mxu1 %v1271_v53  ;;  %v1347_v53 = vld [vmem:[#allocation7 + $0x68] sm:$0xff]  }
  0x58   :  { %704 = vmatpush2.bf16.msra.mxu0 %v1270_v54  ;;  %v1348_v54 = vld [vmem:[#allocation7 + $0x28] sm:$0xff]  }
  0x59   :  { %705 = vmatprep.subr.bf16.mxu0 %v1274_v55  ;;  %745 = vmatpush2.bf16.msra.mxu1 %v1273_v56  ;;  %v1349_v55 = vld [vmem:[#allocation7 + $0x60] sm:$0xff]  }
  0x5a   :  { %746 = vmatprep.subr.bf16.mxu1 %v1277_v57  ;;  %v1350_v56 = vld [vmem:[#allocation7 + $0x20] sm:$0xff]   ;;  %v1351_v57 = vld [vmem:[#allocation7 + $0x58] sm:$0xff]  }
  0x5c   :  { %706 = vmatpush2.bf16.msra.mxu0 %v1276_v58  ;;  %v1352_v58 = vld [vmem:[#allocation7 + $0x18] sm:$0xff]  }
  0x5d   :  { %707 = vmatprep.subr.bf16.mxu0 %v1280_v59  ;;  %747 = vmatpush2.bf16.msra.mxu1 %v1279_v60  ;;  %v1353_v59 = vld [vmem:[#allocation7 + $0x50] sm:$0xff]  }
  0x5e   :  { %748 = vmatprep.subr.bf16.mxu1 %v1283_v61  ;;  %v1354_v60 = vld [vmem:[#allocation7 + $0x10] sm:$0xff]   ;;  %v1355_v61 = vld [vmem:[#allocation7 + $0x48] sm:$0xff]  }
  0x60   :  { %708 = vmatpush2.bf16.msra.mxu0 %v1282_v62  ;;  %v1356_v62 = vld [vmem:[#allocation7 + $0x8] sm:$0xff]  }
  0x61   :  { %709 = vmatprep.subr.bf16.mxu0 %v1286_v63  ;;  %749 = vmatpush2.bf16.msra.mxu1 %v1285_v0  ;;  %v1357_v63 = vld [vmem:[#allocation7 + $0x40] sm:$0xff]  }
  0x62   :  { %750 = vmatprep.subr.bf16.mxu1 %v1289_v2  ;;  %v1358_v0 = vld [vmem:[#allocation7] sm:$0xff]  }
  0x64   :  { %710 = vmatpush2.bf16.msra.mxu0 %v1288_v1 }
  0x65   :  { %761 = vmatprep.subr.bf16.mxu0 %v1294_v5  ;;  %751 = vmatpush2.bf16.msra.mxu1 %v1291_v3 }
  0x66   :  { %816 = vmatprep.subr.bf16.mxu1 %v1339_v12 }
  0x67   :  { %712 = vmatmul.mubr.bf16.vlgmr.msra.gmra.mxu0 %v68_v7 }
  0x68   :  { %762 = vmatpush1.bf16.msra.mxu0 %v1292_v8  ;;  %753 = vmatmul.mubr.bf16.vlgmr.msra.gmra.mxu1 %v70_v10 }
  0x69   :  { %763 = vmatprep.subr.bf16.mxu0 %v1297_v9  ;;  %817 = vmatpush1.bf16.msra.mxu1 %v1337_v11 }
  0x6a   :  { %834 = vmatprep.mubr.bf16.mxu1 %v1460_v19  ;;  %793 = vmatprep.mubr.bf16.mxu0 %v73_v17 }
  0x6b   :  { %1165 = vmatprep.subr.bf16.mxu1 %v1343_v49 }
  0x6c   :  { %764 = vmatpush1.bf16.msra.mxu0 %v1295_v13  ;;  %v175_v13 = vlaneseq }
  0x6d   :  { %765 = vmatprep.subr.bf16.mxu0 %v1300_v14 }
  0x6e   :  { %v176_v14 = vshrl.u32 %v175_v13, 7 }
  0x70   :  { %766 = vmatpush1.bf16.msra.mxu0 %v1298_v18  ;;  %1147 = vmatmul.mubr.msk.bf16.vlgmr.msra.gmra.mxu1 %vm675_vm0, %v74_v21  ;;  %v177_v15 = vsub.s32 0, %v176_v14  ;;  %v181_v17 = vsub.s32 1, %v176_v14 }
  0x71   :  { %767 = vmatprep.subr.bf16.mxu0 %v1303_v20  ;;  %1166 = vmatpush3.bf16.msra.mxu1 %v1344_v50 }
  0x72   :  { %1167 = vmatprep.subr.bf16.mxu1 %v1345_v51  ;;  %v178_v18 = vrot.slane %v173_v16, %v177_v15  ;;  %v182_v19 = vrot.slane %v173_v16, %v181_v17 }
  0x74   :  { %768 = vmatpush1.bf16.msra.mxu0 %v1301_v22 }
  0x75   :  { %769 = vmatprep.subr.bf16.mxu0 %v1306_v23  ;;  %1168 = vmatpush3.bf16.msra.mxu1 %v1346_v52 }
  0x76   :  { %1169 = vmatprep.subr.bf16.mxu1 %v1347_v53 }
  0x78   :  { %770 = vmatpush1.bf16.msra.mxu0 %v1304_v24 }
  0x79   :  { %771 = vmatprep.subr.bf16.mxu0 %v1309_v25  ;;  %1170 = vmatpush3.bf16.msra.mxu1 %v1348_v54 }
  0x7a   :  { %1171 = vmatprep.subr.bf16.mxu1 %v1349_v55 }
  0x7c   :  { %772 = vmatpush1.bf16.msra.mxu0 %v1307_v26 }
  0x7d   :  { %773 = vmatprep.subr.bf16.mxu0 %v1312_v27  ;;  %1172 = vmatpush3.bf16.msra.mxu1 %v1350_v56 }
  0x7e   :  { %1173 = vmatprep.subr.bf16.mxu1 %v1351_v57 }
  0x80   :  { %774 = vmatpush1.bf16.msra.mxu0 %v1310_v28 }
  0x81   :  { %775 = vmatprep.subr.bf16.mxu0 %v1315_v29  ;;  %1174 = vmatpush3.bf16.msra.mxu1 %v1352_v58 }
  0x82   :  { %1175 = vmatprep.subr.bf16.mxu1 %v1353_v59 }
  0x84   :  { %776 = vmatpush1.bf16.msra.mxu0 %v1313_v30 }
  0x85   :  { %777 = vmatprep.subr.bf16.mxu0 %v1318_v31  ;;  %1176 = vmatpush3.bf16.msra.mxu1 %v1354_v60 }
  0x86   :  { %1177 = vmatprep.subr.bf16.mxu1 %v1355_v61 }
  0x88   :  { %778 = vmatpush2.bf16.msra.mxu0 %v1316_v32 }
  0x89   :  { %779 = vmatprep.subr.bf16.mxu0 %v1321_v33  ;;  %1178 = vmatpush3.bf16.msra.mxu1 %v1356_v62 }
  0x8a   :  { %1179 = vmatprep.subr.bf16.mxu1 %v1357_v63 }
  0x8c   :  { %780 = vmatpush2.bf16.msra.mxu0 %v1319_v34 }
  0x8d   :  { %781 = vmatprep.subr.bf16.mxu0 %v1324_v35  ;;  %1180 = vmatpush3.bf16.msra.mxu1 %v1358_v0 }
  0x90   :  { %782 = vmatpush2.bf16.msra.mxu0 %v1322_v36 }
  0x91   :  { %783 = vmatprep.subr.bf16.mxu0 %v1327_v37 }
  0x94   :  { %784 = vmatpush2.bf16.msra.mxu0 %v1325_v38  ;;  %v1148_v38 = vld [vmem:[%s1515_s4] ss:$0 sm:$0xff]  ;;  %s1427_s4 = scalar_lea.vmem %s1040_s13, 128 }
  0x95   :  { %785 = vmatprep.subr.bf16.mxu0 %v1330_v39  ;;  %p1428_p1 = scmp.ne.s32.totalorder %s1040_s13, %s1427_s4  ;;  %p1433_p3 = scmp.lt.s32.totalorder %s1427_s4, %s1427_s4 }
  0x97   :  { %p1434_p4 = por %p1433_p3, %p1432_p2 }
  0x98   :  { %786 = vmatpush2.bf16.msra.mxu0 %v1328_v40 }
  0x99   :  { %787 = vmatprep.subr.bf16.mxu0 %v1333_v41  ;;  %p1435_p5 = pnand %p1434_p4, %p1428_p1 }
  0x9c   :  { %788 = vmatpush2.bf16.msra.mxu0 %v1331_v42 }
  0x9d   :  { %789 = vmatprep.subr.bf16.mxu0 %v1336_v43 }
  0xa0   :  { %790 = vmatpush2.bf16.msra.mxu0 %v1334_v44 }
  0xa1   :  { %791 = vmatprep.subr.bf16.mxu0 %v1342_v45 }
  0xa4   :  { %792 = vmatpush2.bf16.msra.mxu0 %v1340_v46 }
  0xa7   :  { %794 = vmatmul.mubr.bf16.vlgmr.msra.gmra.mxu0 %v72_v48 }
 0x127   :  { %v713_v1 = vpop.f32.mrf.mxu0 }
 0x128   :  { %v754_v3 = vpop.f32.mrf.mxu1  ;;  %v714_v20 = vadd.f32 %v713_v1, %v178_v18 }
 0x129   :  { %v715_v2 = vpop.f32.mrf.mxu0 }
 0x12a   :  { %v756_v5 = vpop.f32.mrf.mxu1  ;;  %v716_v21 = vadd.f32 %v715_v2, %v182_v19  ;;  %v755_v22 = vadd.f32 %v754_v3, %v714_v20 }
 0x12b   :  { %v717_v4 = vpop.f32.mrf.mxu0 }
 0x12c   :  { %v758_v7 = vpop.f32.mrf.mxu1  ;;  %v757_v24 = vadd.f32 %v756_v5, %v716_v21 }
 0x12d   :  { %v718_v6 = vpop.f32.mrf.mxu0 }
 0x12e   :  { %v759_v8 = vpop.f32.mrf.mxu1 }
 0x130   :  { %v836_v9 = vpop.f32.mrf.mxu1 }
 0x132   :  { %v838_v10 = vpop.f32.mrf.mxu1 }
 0x134   :  { %v840_v11 = vpop.f32.mrf.mxu1 }
 0x136   :  { %v841_v12 = vpop.f32.mrf.mxu1 }
 0x167   :  { %v795_v23 = vpop.f32.mrf.mxu0 }
 0x168   :  { %v796_v25 = vadd.f32 %v795_v23, %v755_v22 }
 0x169   :  { %v797_v26 = vpop.f32.mrf.mxu0 }
 0x16a   :  { %v837_v27 = vadd.f32 %v836_v9, %v796_v25  ;;  %v798_v28 = vadd.f32 %v797_v26, %v757_v24 }
 0x16b   :  { %v799_v29 = vpop.f32.mrf.mxu0 }
 0x16c   :  { %v839_v30 = vadd.f32 %v838_v10, %v798_v28  ;;  %1359 = vtanh.f32 %v837_v27 }
 0x16d   :  { %v800_v31 = vpop.f32.mrf.mxu0 }
 0x16e   :  { %1361 = vtanh.f32 %v839_v30 }
 0x179   :  { %v1360_v32 = vpop.eup %1359 }
 0x17a   :  { %v845_v35 = vpack.c.bf16 %v1360_v32, %v1360_v32 }
 0x17b   :  { %v1362_v33 = vpop.eup %1361 }
 0x17c   :  { %v846_v34 = vpack.c.bf16 %v1362_v33, %v1362_v33 }
 0x17e   :  { %1014 = vmatprep.mubr.bf16.mxu1 %v846_v34 }
 0x17f   :  { %1015 = vmatmul.mubr.bf16.vlgmr.msra.gmra.mxu1 %v845_v35 }
 0x23f   :  { %v1181_v36 = vpop.f32.mrf.mxu1 }
 0x241   :  { %v1182_v37 = vpop.f32.mrf.mxu1 }
 0x242   :  { %v1183_v39 = vadd.f32 %v1182_v37, %v1181_v36 }
 0x243   :  { %v1184_v40 = vpop.f32.mrf.mxu1 }
 0x244   :  { %v1017_v41 = vadd.f32 %v1183_v39, %v1148_v38 }
 0x245   :  { %v1185_v42 = vpop.f32.mrf.mxu1 }
 0x246   :  { %1022 = vmax.xlane.f32.xlu0 %v1017_v41 }
 0x2cf   :  { %v1023_v43 = vpop.xlane.xlu0 %1022 }
 0x2d0   :  { %v1024_v44 = vsub.f32 %v1017_v41, %v1023_v43 }
 0x2d2   :  { %v1025_v45 = vmul.f32 1.442695, %v1024_v44 }
 0x2d4   :  { %1363 = vpow2.f32 %v1025_v45 }
 0x2e1   :  { %v1364_v46 = vpop.eup %1363 }
 0x2e2   :  { %1027 = vadd.xlane.f32.xlu0 %v1364_v46 }
 0x36b   :  { %v1028_v47 = vpop.xlane.xlu0 %1027 }
 0x36c   :  { %1365 = vlog2.f32 %v1028_v47 }
 0x379   :  { %v1366_v48 = vpop.eup %1365 }
 0x37a   :  { %v1030_v49 = vmul.f32 0.6931472, %v1366_v48 }
 0x37c   :  { %v1031_v50 = vsub.f32 %v1024_v44, %v1030_v49 }
 0x37e   :  { %1032 = vst [vmem:[#allocation8] sm:$0xff] %v1031_v50 }
 0x37f   :  { %1438 = shalt.err (!%p1435_p5)
}
 0x380   :  { %1042 = dma.vmem_to_hbm [thread:$0]  %s1040_s13, 128, %s1516_s5, [#allocation4]  }
 0x381   :  { %1451 = dma.done.wait [#allocation4], 128  }
 0x382   :  { %1452 = vsyncadd [#allocation4], 4294967168 }
 0x383   :  { %1046 = vsyncpa [#allocation3], 1 }
 0x384   :  { %1047 = vsyncpa [#allocation6], 1 }
 0x385   :  { %1048 = vsyncpa [#allocation4], 1 }

</bundles_post_ra>
